<compile_context>
chip_gen: v7x
topology: tpu7x:2x2x1
jax: 0.10.0
libtpu: 0.0.40
codegen_flags: <defaults>
</compile_context>

<pallas_src>
import functools
import math

import jax
import jax.numpy as jnp
from jax.experimental import pallas as pl
from jax.experimental.pallas import tpu as pltpu

BN_EPS = 1e-5


# ---------------------------------------------------------------------------
# Pallas kernel 1: Attention module, whole batch in one invocation (no grid).
# ---------------------------------------------------------------------------
def _attention_kernel(gap_ref, fcw_ref, wall_ref, ball_ref, att_ref, *, n_soft):
    # gap_ref : (B, Cin)   global-average-pooled input
    # fcw_ref : (Cin, A)   fc weight with the BN eval scale folded in
    # wall_ref: (A, D)     concatenated head weights [kernel | channel | filter | spatial]
    # ball_ref: (1, D)     concatenated head biases
    # att_ref : (B, D)     [softmax(KN) | sigmoid(Cin) | sigmoid(Cout) | sigmoid(KK)]
    g = gap_ref[...]
    h = jnp.dot(g, fcw_ref[...], preferred_element_type=jnp.float32)
    h = jnp.maximum(h, 0.0)                                   # ReLU (BN scale folded)
    logits = jnp.dot(h, wall_ref[...],
                     preferred_element_type=jnp.float32) + ball_ref[...]
    att_ref[...] = jax.nn.sigmoid(logits)                     # temperature = 1
    # kernel attention: softmax over the first n_soft columns
    kl = logits[:, :n_soft]
    kl = kl - jnp.max(kl, axis=-1, keepdims=True)
    ke = jnp.exp(kl)
    att_ref[:, :n_soft] = ke / jnp.sum(ke, axis=-1, keepdims=True)


# ---------------------------------------------------------------------------
# Pallas kernel 2: dynamic conv with in-kernel im2col (tap-shift matmuls).
# Grid = (n_co, B): Cout tile outer, batch inner -> weight block resident
# across the inner axis (one HBM fetch per tile, not per sample).
# ---------------------------------------------------------------------------
def _odconv_kernel(ka_ref, sp_ref, xw_ref, w_ref, ch_ref, fa_ref, o_ref, *,
                   K, KN, Wp, Npad):
    # ka_ref: (B, KN)  SMEM (scalar prefetch)  kernel attention (softmax)
    # sp_ref: (B, KK)  SMEM (scalar prefetch)  spatial attention (sigmoid)
    # xw_ref: (1, Cin, Ntot)  padded+flattened sample (bf16, lane-dense, widened)
    # w_ref : (KN, KK, tco, Cin)  candidate kernels, tap-major layout (bf16)
    # ch_ref: (1, 1, Cin)    channel attention
    # fa_ref: (1, tco, 1)    filter attention
    # o_ref : (1, tco, Npad) output on the lane-padded grid (f32)
    b = pl.program_id(1)                         # batch is the inner grid axis
    m = fa_ref[0] * ch_ref[0]                    # (tco,1)*(1,Cin) -> (tco, Cin) f32
    acc = jnp.zeros(o_ref.shape[1:], jnp.float32)
    for ky in range(K):
        for kx in range(K):
            t = ky * K + kx
            s = ky * Wp + kx
            sp_t = sp_ref[b, t]
            # aggregate over candidate kernels; f32 scalars promote bf16 weights to
            # f32 (v5e-safe, no bf16 VALU needed); MXU operands are cast back to bf16.
            wt = (ka_ref[b, 0] * sp_t) * w_ref[0, t]
            for n in range(1, KN):
                wt = wt + (ka_ref[b, n] * sp_t) * w_ref[n, t]
            wt = wt * m                          # fold channel + filter attention
            xs = xw_ref[0, :, pl.ds(s, Npad)]    # (Cin, Npad) shifted tap view
            acc = acc + jnp.dot(wt.astype(xs.dtype), xs,
                                preferred_element_type=jnp.float32)
    o_ref[0] = acc.astype(o_ref.dtype)


# ---------------------------------------------------------------------------
# Parameter init (deterministic, mirrors shapes of the PyTorch module).
# ---------------------------------------------------------------------------
def init_params(key, in_planes, out_planes, kernel_size, kernel_num,
                groups=1, reduction=0.0625, min_channel=16):
    attn_ch = max(int(in_planes * reduction), min_channel)
    ks = jax.random.split(key, 6)

    def kaiming_conv(k, out_c, in_c, kh, kw):
        fan_out = out_c * kh * kw
        std = math.sqrt(2.0 / fan_out)
        return std * jax.random.normal(k, (out_c, in_c, kh, kw), jnp.float32)

    kk = kernel_size * kernel_size
    w_std = math.sqrt(2.0 / (out_planes * kk))
    return {
        "fc_w": kaiming_conv(ks[0], attn_ch, in_planes, 1, 1),
        "channel_fc_w": kaiming_conv(ks[1], in_planes, attn_ch, 1, 1),
        "channel_fc_b": jnp.zeros((in_planes,), jnp.float32),
        "filter_fc_w": kaiming_conv(ks[2], out_planes, attn_ch, 1, 1),
        "filter_fc_b": jnp.zeros((out_planes,), jnp.float32),
        "spatial_fc_w": kaiming_conv(ks[3], kk, attn_ch, 1, 1),
        "spatial_fc_b": jnp.zeros((kk,), jnp.float32),
        "kernel_fc_w": kaiming_conv(ks[4], kernel_num, attn_ch, 1, 1),
        "kernel_fc_b": jnp.zeros((kernel_num,), jnp.float32),
        "weight": w_std * jax.random.normal(
            ks[5], (kernel_num, out_planes, in_planes // groups,
                    kernel_size, kernel_size), jnp.float32),
    }


# ---------------------------------------------------------------------------
# One-time parameter preprocessing (hoisted out of the forward pass).
# ---------------------------------------------------------------------------
def prepare_odconv(params, *, kernel_size, kernel_num):
    K = kernel_size
    KK = K * K
    KN, Cout, Cin = (params["weight"].shape[0], params["weight"].shape[1],
                     params["weight"].shape[2])
    assert KN == kernel_num
    A = params["fc_w"].shape[0]

    bn_scale = 1.0 / math.sqrt(1.0 + BN_EPS)      # BN eval-mode, identity stats
    fcT = params["fc_w"][:, :, 0, 0].T * bn_scale                 # (Cin, A)
    w_all = jnp.concatenate(
        [params["kernel_fc_w"][:, :, 0, 0].T,                     # (A, KN)
         params["channel_fc_w"][:, :, 0, 0].T,                    # (A, Cin)
         params["filter_fc_w"][:, :, 0, 0].T,                     # (A, Cout)
         params["spatial_fc_w"][:, :, 0, 0].T], axis=1)           # (A, KK)
    b_all = jnp.concatenate(
        [params["kernel_fc_b"], params["channel_fc_b"],
         params["filter_fc_b"], params["spatial_fc_b"]]).reshape(1, -1)
    # (KN, Cout, Cin, K, K) -> (KN, KK, Cout, Cin): tap-major, stored bf16 (halves HBM).
    w_r = jnp.transpose(params["weight"], (0, 3, 4, 1, 2)).reshape(
        KN, KK, Cout, Cin).astype(jnp.bfloat16)

    return {
        "fcT": jax.device_put(fcT),
        "w_all": jax.device_put(w_all),
        "b_all": jax.device_put(b_all),
        "w_r": jax.device_put(w_r),
        "dims": (Cin, Cout, K, KN, A),
    }


def _tpu_vmem_capacity_bytes():
    cap = 64 * 1024 * 1024                       # conservative default (v7x-sized)
    try:
        info = pltpu.get_tpu_info()
        cap = int(getattr(info, "vmem_capacity_bytes", cap))
    except Exception:
        pass
    return cap


def _pick_cout_tile(cout, cin, kn, kk, ntot, npad, budget, max_tile=256):
    """Largest Cout tile (divisor, multiple of 8 or full) whose VMEM footprint fits."""
    cands = [t for t in range(min(cout, max_tile), 0, -1)
             if cout % t == 0 and (t % 8 == 0 or t == cout)]
    if not cands:
        cands = [cout]
    for t in cands:
        w_b = kn * kk * t * cin * 2 * 2          # bf16 weight block, double buffered
        x_b = cin * ntot * 2 * 2                 # bf16 input block, double buffered
        o_b = t * npad * 4 * 2                   # f32 output block, double buffered
        tmp = t * npad * 4 + t * cin * 4         # f32 accumulator + per-tap weight
        if w_b + x_b + o_b + tmp <= budget:
            return t
    return cands[-1]


# ---------------------------------------------------------------------------
# Forward wrapper (only layout glue: reshape / pad / crop in XLA).
# ---------------------------------------------------------------------------
def odconv2d_forward(prep, x, *, stride=1, padding=0, dilation=1, groups=1):
    # TODO(synk): general stride/dilation/groups not implemented (common path only).
    assert stride == 1 and dilation == 1 and groups == 1
    Cin, Cout, K, KN, A = prep["dims"]
    B, Cin_x, H, W = x.shape
    assert Cin_x == Cin
    KK = K * K
    Dtot = KN + Cin + Cout + KK

    # ---------------- attention (one un-gridded Pallas call) ----------------
    gap = jnp.mean(x, axis=(2, 3)).astype(jnp.float32)            # (B, Cin)
    att = pl.pallas_call(
        functools.partial(_attention_kernel, n_soft=KN),
        out_shape=jax.ShapeDtypeStruct((B, Dtot), jnp.float32),
    )(gap, prep["fcT"], prep["w_all"], prep["b_all"])

    ka = att[:, :KN]                                              # (B, KN)  softmax
    ch = att[:, KN:KN + Cin]                                      # (B, Cin) sigmoid
    fa = att[:, KN + Cin:KN + Cin + Cout]                         # (B, Cout) sigmoid
    sp = att[:, KN + Cin + Cout:]                                 # (B, KK)  sigmoid

    # ---------------- dynamic conv (per-sample aggregated weight) -----------
    p = padding
    Hp, Wp = H + 2 * p, W + 2 * p
    Hout, Wout = Hp - K + 1, Wp - K + 1
    assert Hout > 0 and Wout > 0
    Np = Hp * Wp
    Npad = ((Np + 127) // 128) * 128              # lane-dense output / matmul N
    smax = (K - 1) * Wp + (K - 1)
    Ntot = ((Npad + smax + 127) // 128) * 128     # widened so every tap slice is in-bounds

    # pad spatially, flatten, widen the lane axis; bf16 for the MXU operand.
    xp = jnp.pad(x, ((0, 0), (0, 0), (p, p), (p, p))).reshape(B, Cin, Np)
    xwide = jnp.pad(xp, ((0, 0), (0, 0), (0, Ntot - Np))).astype(jnp.bfloat16)

    # VMEM budget derived from the actual part (64 MiB v7x vs 128 MiB v5e/v6e).
    vmem_cap = _tpu_vmem_capacity_bytes()
    vmem_limit = min(vmem_cap * 3 // 4, 96 * 1024 * 1024)
    tco = _pick_cout_tile(Cout, Cin, KN, KK, Ntot, Npad, budget=vmem_limit // 2)
    n_co = Cout // tco

    ch3 = ch.reshape(B, 1, Cin)
    fa3 = fa.reshape(B, Cout, 1)

    # Grid (n_co, B): batch innermost so the weight block (index depends only on co)
    # stays resident in VMEM across all samples -> ~1x weight HBM traffic total.
    grid_spec = pltpu.PrefetchScalarGridSpec(
        num_scalar_prefetch=2,                                    # ka, sp -> SMEM
        grid=(n_co, B),
        in_specs=[
            pl.BlockSpec((1, Cin, Ntot), lambda co, b, ka, sp: (b, 0, 0)),
            pl.BlockSpec((KN, KK, tco, Cin), lambda co, b, ka, sp: (0, 0, co, 0)),
            pl.BlockSpec((1, 1, Cin), lambda co, b, ka, sp: (b, 0, 0)),
            pl.BlockSpec((1, tco, 1), lambda co, b, ka, sp: (b, co, 0)),
        ],
        out_specs=pl.BlockSpec((1, tco, Npad), lambda co, b, ka, sp: (b, co, 0)),
    )

    out_flat = pl.pallas_call(
        functools.partial(_odconv_kernel, K=K, KN=KN, Wp=Wp, Npad=Npad),
        out_shape=jax.ShapeDtypeStruct((B, Cout, Npad), jnp.float32),
        grid_spec=grid_spec,
        compiler_params=pltpu.CompilerParams(
            dimension_semantics=("parallel", "parallel"),
            vmem_limit_bytes=int(vmem_limit)),
    )(ka, sp, xwide, prep["w_r"], ch3, fa3)

    # crop the lane-padded grid back to the true conv output window.
    out = out_flat[:, :, :Np].reshape(B, Cout, Hp, Wp)[:, :, :Hout, :Wout]
    return out


# ---------------------------------------------------------------------------
# Pure-JAX f32 reference of the PyTorch forward (for a correctness check).
# ---------------------------------------------------------------------------
def _reference_forward(params, x, *, kernel_size, padding, kernel_num):
    B, Cin, H, W = x.shape
    K = kernel_size
    KK = K * K
    Cout = params["weight"].shape[1]
    gap = jnp.mean(x, axis=(2, 3))
    h = gap @ params["fc_w"][:, :, 0, 0].T
    h = h / jnp.sqrt(1.0 + BN_EPS)
    h = jnp.maximum(h, 0.0)
    ch = jax.nn.sigmoid(h @ params["channel_fc_w"][:, :, 0, 0].T + params["channel_fc_b"])
    fl = jax.nn.sigmoid(h @ params["filter_fc_w"][:, :, 0, 0].T + params["filter_fc_b"])
    sp = jax.nn.sigmoid(h @ params["spatial_fc_w"][:, :, 0, 0].T + params["spatial_fc_b"])
    ka = jax.nn.softmax(h @ params["kernel_fc_w"][:, :, 0, 0].T + params["kernel_fc_b"],
                        axis=-1)
    agg = jnp.einsum("bn,bst,nocst->bocst", ka, sp.reshape(B, K, K), params["weight"])
    agg = agg.reshape(B, Cout, Cin * KK)
    xs = x * ch[:, :, None, None]
    xp = jnp.pad(xs, ((0, 0), (0, 0), (padding, padding), (padding, padding)))
    Hout = H + 2 * padding - K + 1
    Wout = W + 2 * padding - K + 1
    cols = [xp[:, :, ky:ky + Hout, kx:kx + Wout] for ky in range(K) for kx in range(K)]
    patches = jnp.stack(cols, axis=2).reshape(B, Cin * KK, Hout * Wout)
    out = jnp.einsum("bor,brq->boq", agg, patches).reshape(B, Cout, Hout, Wout)
    return out * fl[:, :, None, None]


if __name__ == "__main__":
    key = jax.random.PRNGKey(0)
    pkey, xkey = jax.random.split(key)

    B, Cin, H, W = 2, 4, 16, 16
    Cout, K, KN = 8, 3, 4

    params = init_params(pkey, Cin, Cout, K, KN)
    prep = prepare_odconv(params, kernel_size=K, kernel_num=KN)   # hoisted, once
    x = jax.random.normal(xkey, (B, Cin, H, W), jnp.float32)

    out = odconv2d_forward(prep, x, stride=1, padding=1)
    out = jax.block_until_ready(out)

    assert out.shape == (B, Cout, H, W), out.shape
    assert bool(jnp.all(jnp.isfinite(out)))

    ref = _reference_forward(params, x, kernel_size=K, padding=1, kernel_num=KN)
    max_err = float(jnp.max(jnp.abs(out - ref)))
    # NOTE: bf16 MXU operands -> error grows ~sqrt(Cin)*2^-8 relative at larger Cin.
    assert max_err < 5e-2, f"max abs error vs f32 reference: {max_err}"

    print("KERNEL_OK")
</pallas_src>

<mosaic_0001>
module attributes {stable_mosaic.version = 11 : i64} {
  func.func @_attention_kernel(%arg0: memref<2x4xf32, #tpu.memory_space<vmem>>, %arg1: memref<4x16xf32, #tpu.memory_space<vmem>>, %arg2: memref<16x25xf32, #tpu.memory_space<vmem>>, %arg3: memref<1x25xf32, #tpu.memory_space<vmem>>, %arg4: memref<2x25xf32, #tpu.memory_space<vmem>>) attributes {dimension_semantics = [], scalar_prefetch = 0 : i64, scratch_operands = 0 : i64, tpu.core_type = #tpu.core_type<tc>} {
    %c0 = arith.constant 0 : index
    %c0_0 = arith.constant 0 : index
    %0 = vector.load %arg0[%c0, %c0_0] : memref<2x4xf32, #tpu.memory_space<vmem>>, vector<2x4xf32>
    %c0_1 = arith.constant 0 : index
    %c0_2 = arith.constant 0 : index
    %1 = vector.load %arg1[%c0_1, %c0_2] : memref<4x16xf32, #tpu.memory_space<vmem>>, vector<4x16xf32>
    %cst = arith.constant dense<0.000000e+00> : vector<2x16xf32>
    %2 = tpu.matmul %0, %1, %cst {dimension_numbers = #tpu.dot_dimension_numbers<[1], [0], [0], [1], [0, 0, 1, 1], [], []>} : vector<2x4xf32>, vector<4x16xf32>, vector<2x16xf32> -> vector<2x16xf32>
    %cst_3 = arith.constant 0.000000e+00 : f32
    %3 = vector.broadcast %cst_3 : f32 to vector<2x16xf32>
    %4 = arith.maximumf %2, %3 : vector<2x16xf32>
    %c0_4 = arith.constant 0 : index
    %c0_5 = arith.constant 0 : index
    %5 = vector.load %arg2[%c0_4, %c0_5] : memref<16x25xf32, #tpu.memory_space<vmem>>, vector<16x25xf32>
    %cst_6 = arith.constant dense<0.000000e+00> : vector<2x25xf32>
    %6 = tpu.matmul %4, %5, %cst_6 {dimension_numbers = #tpu.dot_dimension_numbers<[1], [0], [0], [1], [0, 0, 1, 1], [], []>} : vector<2x16xf32>, vector<16x25xf32>, vector<2x25xf32> -> vector<2x25xf32>
    %c0_7 = arith.constant 0 : index
    %c0_8 = arith.constant 0 : index
    %7 = vector.load %arg3[%c0_7, %c0_8] : memref<1x25xf32, #tpu.memory_space<vmem>>, vector<1x25xf32>
    %8 = vector.broadcast %7 : vector<1x25xf32> to vector<2x25xf32>
    %9 = arith.addf %6, %8 : vector<2x25xf32>
    %10 = arith.negf %9 : vector<2x25xf32>
    %11 = math.exp %10 : vector<2x25xf32>
    %cst_9 = arith.constant 1.000000e+00 : f32
    %12 = vector.broadcast %cst_9 : f32 to vector<2x25xf32>
    %13 = arith.addf %12, %11 : vector<2x25xf32>
    %14 = arith.divf %12, %13 : vector<2x25xf32>
    %c0_10 = arith.constant 0 : index
    %c0_11 = arith.constant 0 : index
    %15 = vector.load %arg4[%c0_10, %c0_11] : memref<2x25xf32, #tpu.memory_space<vmem>>, vector<2x25xf32>
    tpu.vector_store %arg4[%c0_10, %c0_11], %14 {strides = array<i32>} : memref<2x25xf32, #tpu.memory_space<vmem>>, vector<2x25xf32>,
    %16 = vector.extract_strided_slice %9 {offsets = [0, 0], sizes = [2, 4], strides = [1, 1]} : vector<2x25xf32> to vector<2x4xf32>
    %cst_12 = arith.constant dense<0xFF800000> : vector<2xf32>
    %17 = vector.multi_reduction <maximumf>, %16, %cst_12 [1] : vector<2x4xf32> to vector<2xf32>
    %18 = vector.shape_cast %17 : vector<2xf32> to vector<2x1xf32>
    %19 = vector.broadcast %18 : vector<2x1xf32> to vector<2x4xf32>
    %20 = arith.subf %16, %19 : vector<2x4xf32>
    %21 = math.exp %20 : vector<2x4xf32>
    %cst_13 = arith.constant dense<0.000000e+00> : vector<2xf32>
    %22 = vector.multi_reduction <add>, %21, %cst_13 [1] : vector<2x4xf32> to vector<2xf32>
    %23 = vector.shape_cast %22 : vector<2xf32> to vector<2x1xf32>
    %24 = vector.broadcast %23 : vector<2x1xf32> to vector<2x4xf32>
    %25 = arith.divf %21, %24 : vector<2x4xf32>
    %c0_14 = arith.constant 0 : index
    %c0_15 = arith.constant 0 : index
    %26 = vector.load %arg4[%c0_14, %c0_15] : memref<2x25xf32, #tpu.memory_space<vmem>>, vector<2x4xf32>
    tpu.vector_store %arg4[%c0_14, %c0_15], %25 {strides = array<i32>} : memref<2x25xf32, #tpu.memory_space<vmem>>, vector<2x4xf32>,
    return
  }
}

</mosaic_0001>

<bundles_post_ra>
// kernel: tpu_custom_call.1
= control target key start
LH: loop header
LB: loop body
LE: loop exit
PB: predicated region body
PF: predicated region fallthrough
CT: control target
= control target key end

     0   :  { %9 = vsyncpa [#allocation3], 0  ;;  %s480_s0 = inlined_call_operand.hbm [shape: f32[2,4], index: 0, kind: input, shape index: {}]   ;;  %s481_s1 = inlined_call_operand.hbm [shape: f32[4,16], index: 1, kind: input, shape index: {}]   ;;  %s482_s2 = inlined_call_operand.hbm [shape: f32[16,25], index: 2, kind: input, shape index: {}]   ;;  %s483_s3 = inlined_call_operand.vmem [shape: f32[1,25], index: 3, kind: input, shape index: {}]   ;;  %s484_s4 = inlined_call_operand.hbm [shape: f32[2,25], index: 4, kind: output, shape index: {}]  }
   0x1   :  { %10 = vsyncpa [#allocation6], 0 }
   0x2   :  { %11 = vsyncpa [#allocation4], 0  ;;  %s392_s15 = smov [#allocation5]   ;;  %s393_s17 = smov [#allocation2]  }
   0x3   :  { %s28_s16 = sshll.u32 %s392_s15, 4  ;;  %s18_s18 = sshll.u32 %s393_s17, 4  ;;  %s29_s16 = int_to_ptr.vmem [resolvable:$true] %s28_s16  ;;  %s19_s18 = int_to_ptr.vmem [resolvable:$true] %s18_s18 }
   0x4   :  { %s298_s21 = scalar_lea.hbm %s481_s1, 64 }
   0x5   :  { %p299_p0 = scmp.ne.s32.totalorder %s481_s1, %s298_s21  ;;  %p302_p1 = scmp.lt.u32.totalorder %s298_s21, %s481_s1 }
   0x7   :  { %p304_p2 = pnand %p302_p1, %p299_p0 }
   0x9   :  { %307 = shalt.err (!%p304_p2)
}
   0xa   :  { %s308_s26 = scalar_lea.vmem %s29_s16, 64  ;;  %p313_p4 = scmp.lt.s32.totalorder %s29_s16, %s29_s16 }
   0xb   :  { %p309_p3 = scmp.ne.s32.totalorder %s29_s16, %s308_s26  ;;  %p314_p5 = scmp.lt.s32.totalorder %s308_s26, %s308_s26 }
   0xd   :  { %p315_p6 = por %p314_p5, %p313_p4 }
   0xf   :  { %p316_p7 = pnand %p315_p6, %p309_p3 }
  0x11   :  { %319 = shalt.err (!%p316_p7)
}
  0x12   :  { %31 = dma.hbm_to_vmem [thread:$0]  %s481_s1, 64, %s29_s16, [#allocation6]  }
  0x13   :  { %s320_s5 = scalar_lea.hbm %s480_s0, 32 }
  0x14   :  { %p321_p8 = scmp.ne.s32.totalorder %s480_s0, %s320_s5  ;;  %p324_p9 = scmp.lt.u32.totalorder %s320_s5, %s480_s0 }
  0x16   :  { %p326_p10 = pnand %p324_p9, %p321_p8 }
  0x18   :  { %329 = shalt.err (!%p326_p10)
}
  0x19   :  { %s330_s10 = scalar_lea.vmem %s19_s18, 32  ;;  %p335_p12 = scmp.lt.s32.totalorder %s19_s18, %s19_s18 }
  0x1a   :  { %p331_p11 = scmp.ne.s32.totalorder %s19_s18, %s330_s10  ;;  %p336_p13 = scmp.lt.s32.totalorder %s330_s10, %s330_s10 }
  0x1c   :  { %p337_p0 = por %p336_p13, %p335_p12 }
  0x1e   :  { %p338_p1 = pnand %p337_p0, %p331_p11 }
  0x20   :  { %341 = shalt.err (!%p338_p1)
}
  0x21   :  { %21 = dma.hbm_to_vmem [thread:$0]  %s480_s0, 32, %s19_s18, [#allocation3]  }
  0x22   :  { %s394_s12 = smov [#allocation7]   ;;  %s342_s16 = scalar_lea.hbm %s482_s2, 256 }
  0x23   :  { %s37_s13 = sshll.u32 %s394_s12, 4  ;;  %p343_p2 = scmp.ne.s32.totalorder %s482_s2, %s342_s16  ;;  %s38_s13 = int_to_ptr.vmem [resolvable:$true] %s37_s13 }
  0x24   :  { %p346_p3 = scmp.lt.u32.totalorder %s342_s16, %s482_s2 }
  0x26   :  { %p348_p4 = pnand %p346_p3, %p343_p2 }
  0x28   :  { %351 = shalt.err (!%p348_p4)
}
  0x29   :  { %s352_s22 = scalar_lea.vmem %s38_s13, 256  ;;  %p357_p6 = scmp.lt.s32.totalorder %s38_s13, %s38_s13 }
  0x2a   :  { %p353_p5 = scmp.ne.s32.totalorder %s38_s13, %s352_s22  ;;  %p358_p7 = scmp.lt.s32.totalorder %s352_s22, %s352_s22 }
  0x2c   :  { %p359_p8 = por %p358_p7, %p357_p6 }
  0x2e   :  { %p360_p9 = pnand %p359_p8, %p353_p5 }
  0x30   :  { %363 = shalt.err (!%p360_p9)
}
  0x31   :  { %s395_s0 = smov 128   ;;  %s396_s18 = smov 8  }
  0x32   :  { %43 = dma.hbm_to_vmem [thread:$0]  %s482_s2, 256, %s38_s13, [#allocation6], %s395_s0, %s395_s0, %s396_s18  }
  0x33   :  { %386 = dma.done.wait [#allocation3], 32  }
  0x34   :  { %387 = vsyncadd [#allocation3], 4294967264 }
  0x35   :  { %388 = dma.done.wait [#allocation6], 320  }
  0x36   :  { %389 = vsyncadd [#allocation6], 4294966976  ;;  %v397_v0 = vmov 0.0   ;;  %vm398_vm0 = vmmov 0   ;;  %v399_v1 = vmov 0.0|0.0   ;;  %vm61_vm1 = vcmask 1043456  }
  0x37   :  { %266 = vmatprep.subr.mxu0 %v397_v0  ;;  %268 = vmatprep.mubr.msk.f32.mxu0 %vm398_vm0, %v397_v0  ;;  %vm57_vm2 = vcmask 31744   ;;  %v56_v2 = vld [vmem:[#allocation5] sm:$0xf]  ;;  %v55_v3 = vld [vmem:[#allocation2] sm:$0x3]  ;;  %v136_v4 = vld [vmem:[#allocation7] sm:$0xff] }
  0x38   :  { %278 = vmatprep.subr.bf16.mxu1 %v399_v1  ;;  %275 = vmatprep.mubr.msk.f32.mxu1 %vm398_vm0, %v397_v0  ;;  %v137_v5 = vld [vmem:[#allocation7 + $0x8] sm:$0xff]  ;;  %vm145_vm3 = vcmask 130048   ;;  %v258_v10 = vld [vmem:[%s483_s3] ss:$0 sm:$0xff]  ;;  %vm227_vm4 = vcmask 25600   ;;  %vm225_vm5 = vcmask 197632  }
  0x39   :  { %267 = vmatpush3.msk.msra.mxu0 %vm61_vm1, %v56_v2  ;;  %v279_v6 = vpack.c.bf16 %v137_v5, %v136_v4  ;;  %s400_s3 = smov [#allocation8]  }
  0x3a   :  { %269 = vmatmul.mubr.msk.f32.vlgmr.msra.gmra.mrb[0].mxu0 %vm57_vm2, %v55_v3  ;;  %s246_s26 = sshll.u32 %s400_s3, 4  ;;  %s247_s26 = int_to_ptr.vmem [resolvable:$true] %s246_s26 }
  0x3b   :  { %280 = vmatpush3.bf16.msra.mxu1 %v279_v6  ;;  %s364_s27 = scalar_lea.vmem %s247_s26, 32  ;;  %p369_p11 = scmp.lt.s32.totalorder %s247_s26, %s247_s26 }
  0x3c   :  { %p365_p10 = scmp.ne.s32.totalorder %s247_s26, %s364_s27  ;;  %p370_p12 = scmp.lt.s32.totalorder %s364_s27, %s364_s27 }
  0x3e   :  { %p371_p13 = por %p370_p12, %p369_p11 }
  0x40   :  { %p372_p0 = pnand %p371_p13, %p365_p10 }
 0x10d   :  { %v131_v7 = vpop.f32.mrb[0].mxu0 }
 0x10e   :  { %v135_v8 = vmax.f32 %v131_v7, 0.0  ;;  %v270_v9 = vpop.f32.mrb[1].mxu0 }
 0x110   :  { %276 = vmatmul.mubr.msk.f32.vlgmr.msra.gmra.mrb[0].mxu1 %vm145_vm3, %v135_v8 }
 0x1e3   :  { %v215_v11 = vpop.f32.mrb[0].mxu1 }
 0x1e4   :  { %v216_v12 = vadd.f32 %v258_v10, %v215_v11  ;;  %v277_v13 = vpop.f32.mrb[1].mxu1 }
 0x1e6   :  { %v260_v14 = vmul.f32 -1.442695, %v216_v12  ;;  %v228_v15 = vsel %vm227_vm4, %v216_v12, -inf }
 0x1e7   :  { %229 = vmax.xlane.f32.xlu0 %v228_v15 }
 0x1e8   :  { %290 = vpow2.f32 %v260_v14 }
 0x1f2   :  { %v291_v16 = vpop.eup %290 }
 0x1f3   :  { %v222_v17 = vadd.f32 1.0, %v291_v16 }
 0x1f5   :  { %292 = vrcp.f32 %v222_v17 }
 0x1ff   :  { %v293_v18 = vpop.eup %292 }
 0x200   :  { %226 = vst.msk [vmem:[#allocation8] sm:$0x3] %vm225_vm5, %v293_v18 }
 0x274   :  { %v230_v19 = vpop.xlane.xlu0 %229 }
 0x275   :  { %v231_v20 = vsub.f32 %v216_v12, %v230_v19 }
 0x277   :  { %v232_v21 = vmul.f32 1.442695, %v231_v20 }
 0x279   :  { %294 = vpow2.f32 %v232_v21 }
 0x283   :  { %v295_v22 = vpop.eup %294 }
 0x284   :  { %v234_v23 = vsel %vm227_vm4, %v295_v22, 0.0 }
 0x285   :  { %235 = vadd.xlane.f32.xlu0 %v234_v23 }
 0x312   :  { %v236_v24 = vpop.xlane.xlu0 %235 }
 0x313   :  { %296 = vrcp.f32 %v236_v24 }
 0x31d   :  { %v297_v25 = vpop.eup %296 }
 0x31e   :  { %v238_v26 = vmul.f32 %v297_v25, %v295_v22 }
 0x320   :  { %239 = vst.msk [vmem:[#allocation8] sm:$0x3] %vm227_vm4, %v238_v26 }
 0x321   :  { %375 = shalt.err (!%p372_p0)
}
 0x322   :  { %s376_s30 = scalar_lea.hbm %s484_s4, 32 }
 0x323   :  { %p377_p1 = scmp.ne.s32.totalorder %s484_s4, %s376_s30  ;;  %p380_p2 = scmp.lt.u32.totalorder %s376_s30, %s484_s4 }
 0x325   :  { %p382_p3 = pnand %p380_p2, %p377_p1 }
 0x327   :  { %385 = shalt.err (!%p382_p3)
}
 0x328   :  { %249 = dma.vmem_to_hbm [thread:$0]  %s247_s26, 32, %s484_s4, [#allocation4]  }
 0x329   :  { %390 = dma.done.wait [#allocation4], 32  }
 0x32a   :  { %391 = vsyncadd [#allocation4], 4294967264 }
 0x32b   :  { %253 = vsyncpa [#allocation3], 1 }
 0x32c   :  { %254 = vsyncpa [#allocation6], 1 }
 0x32d   :  { %255 = vsyncpa [#allocation4], 1 }

</bundles_post_ra>
